<compile_context>
chip_gen: v7x
topology: tpu7x:2x2x1
jax: 0.10.0
libtpu: 0.0.40
codegen_flags: <defaults>
</compile_context>

<pallas_src>
import jax
import jax.numpy as jnp
from jax.experimental import pallas as pl
from jax.experimental.pallas import tpu as pltpu


# ----------------------------------------------------------------------------
# Model config: 7 valid (padding=0, stride=1) convs, each followed by ReLU.
#   (Cin, Cout, K) per layer, input spatial 10x10 -> output 2x2, Cout=15.
# ----------------------------------------------------------------------------
LAYERS = [
    (1, 3, 2),
    (3, 5, 2),
    (5, 7, 3),
    (7, 9, 2),
    (9, 11, 3),
    (11, 13, 2),
    (13, 15, 1),
]

H_IN = W_IN = 10
H_OUT = H_IN - sum(k - 1 for _, _, k in LAYERS)      # 2
W_OUT = W_IN - sum(k - 1 for _, _, k in LAYERS)      # 2
C_OUT = LAYERS[-1][1]                                # 15

LANES = 128          # compute width (flattened spatial 100 <= 128)
ROWS = 16            # per-layer row stride in the packed weight buffer (Cout <= 15)
RHS_ROWS = 96        # im2col staging rows (max padded contraction = 88)
RHS_LANES = 256      # staging width: shifted canvas reads go up to lane 22+127 < 256


def _round8(n):
    return -(-n // 8) * 8


def _flop_count():
    h = w = H_IN
    f = 0
    for cin, cout, k in LAYERS:
        h, w = h - k + 1, w - k + 1
        f += 2 * h * w * k * k * cin * cout
    return f


_FLOPS = _flop_count()
_BYTES = 4 * (H_IN * W_IN + ROWS * len(LAYERS) * LANES + C_OUT * LANES)


def _conv_chain_kernel(x_ref, wb_ref, out_ref, rhs_ref):
    """x_ref: (1, 100) input; wb_ref: (112, 128) packed weights+biases;
    out_ref: (15, 128) output canvas; rhs_ref: (96, 256) f32 im2col staging.

    rhs_ref layout (lanes [0,128) feed the matmul; lanes [128,256) stay zero so
    shifted window reads past lane 127 see zeros):
      row 0                        : ones  (picks up the bias column of wb)
      rows [1, 1+cin)              : activation canvas == tap-0 window
      rows [1+t*cin, 1+(t+1)*cin)  : lane-shifted window of kernel tap t (t >= 1)
      rows [kk+1, kk8)             : zero / stale, multiplied by zero wb columns
    """
    # Zero fill is REQUIRED: padded contraction rows and the shifted-read tails
    # must be finite (0 * uninitialized-NaN would poison the fused matmul).
    rhs_ref[...] = jnp.zeros((RHS_ROWS, RHS_LANES), jnp.float32)
    rhs_ref[0:1, 0:LANES] = jnp.ones((1, LANES), jnp.float32)
    # Input pad folded into the kernel: lanes [100,128) of the canvas stay zero.
    rhs_ref[1:2, 0:H_IN * W_IN] = x_ref[...]

    n_layers = len(LAYERS)
    for li, (cin, cout, k) in enumerate(LAYERS):
        r0 = ROWS * li
        kk = k * k * cin
        kk8 = _round8(kk + 1)   # sublane-aligned contraction (free: wb is 0 there)

        # Stage the im2col RHS.  Tap 0 is the canvas itself; taps t >= 1 are
        # static lane-offset windows (canvas stride = W_IN = 10) copied into
        # their row block.  Pure load/store + XLU shift work, no matmuls here.
        for ky in range(k):
            for kx in range(k):
                t = ky * k + kx
                if t == 0:
                    continue
                s = ky * W_IN + kx
                rhs_ref[1 + t * cin:1 + (t + 1) * cin, 0:LANES] = (
                    rhs_ref[1:1 + cin, s:s + LANES])

        # One MXU contraction per layer; bias folded in via the ones row.
        y = jnp.maximum(
            jnp.dot(wb_ref[r0:r0 + cout, 0:kk8],
                    rhs_ref[0:kk8, 0:LANES],
                    preferred_element_type=jnp.float32),
            0.0)

        if li + 1 < n_layers:
            rhs_ref[1:1 + cout, 0:LANES] = y      # becomes next layer's canvas
        else:
            out_ref[...] = y                      # final layer: lane-dense store


def pack_params(weights_hwio, biases):
    """Pack all 7 layers into one (7*16, 128) f32 buffer.

    Row block [16*l, 16*l + Cout) of layer l, per output channel co:
      column  0                : bias[co]      (matches the ones row of the RHS)
      columns [1, 1 + K*K*Cin) : im2col weights W[co, (ky*K + kx)*Cin + ci]
      remaining columns        : zero (padded contraction dim reads them as 0)
    """
    wb = jnp.zeros((ROWS * len(LAYERS), LANES), jnp.float32)
    for li, ((cin, cout, k), w, b) in enumerate(zip(LAYERS, weights_hwio, biases)):
        kk = k * k * cin
        w2 = jnp.transpose(w.reshape(kk, cout))          # (cout, kk), (ky,kx,ci) cols
        wb = wb.at[ROWS * li:ROWS * li + cout, 1:1 + kk].set(w2)
        wb = wb.at[ROWS * li:ROWS * li + cout, 0].set(b.reshape(cout))
    return wb


@jax.jit
def conv_chain_nchw(x_nchw, wb_packed):
    """x_nchw: (1, 1, 10, 10) f32 -> (1, 15, 2, 2) f32 (matches the torch module)."""
    # NCHW with N=C=1 flattens row-major with a pure reshape (no transpose); the
    # pad to 128 lanes happens inside the kernel via the zero-filled canvas.
    x_flat = x_nchw.reshape(1, H_IN * W_IN).astype(jnp.float32)

    vmem = pl.BlockSpec(memory_space=pltpu.MemorySpace.VMEM)
    out_canvas = pl.pallas_call(
        _conv_chain_kernel,
        out_shape=jax.ShapeDtypeStruct((C_OUT, LANES), jnp.float32),
        in_specs=[vmem, vmem],
        out_specs=vmem,
        scratch_shapes=[pltpu.VMEM((RHS_ROWS, RHS_LANES), jnp.float32)],
        cost_estimate=pl.CostEstimate(
            flops=_FLOPS, transcendentals=0, bytes_accessed=_BYTES),
    )(x_flat, wb_packed)

    # out_canvas[c, h*W_IN + w] -> (1, C_OUT, H_OUT, W_OUT): reshape + slice only.
    out = out_canvas[:, :H_OUT * W_IN].reshape(C_OUT, H_OUT, W_IN)[:, :, :W_OUT]
    return out.reshape(1, C_OUT, H_OUT, W_OUT)


def init_params(key):
    """Deterministic PyTorch-like uniform(-1/sqrt(fan_in), +1/sqrt(fan_in)) init."""
    weights, biases = [], []
    for (cin, cout, k) in LAYERS:
        key, kw, kb = jax.random.split(key, 3)
        bound = 1.0 / jnp.sqrt(cin * k * k)
        w = jax.random.uniform(kw, (k, k, cin, cout), jnp.float32, -bound, bound)
        b = jax.random.uniform(kb, (cout,), jnp.float32, -bound, bound)
        weights.append(w)
        biases.append(b)
    return weights, biases


def _reference(x_nchw, weights, biases):
    """Pure-JAX reference (lax conv) for the correctness check."""
    y = x_nchw.astype(jnp.float32)
    for w, b in zip(weights, biases):
        w_oihw = jnp.transpose(w, (3, 2, 0, 1))          # HWIO -> OIHW
        y = jax.lax.conv_general_dilated(
            y, w_oihw, window_strides=(1, 1), padding="VALID",
            dimension_numbers=("NCHW", "OIHW", "NCHW"))
        y = y + b.reshape(1, -1, 1, 1)
        y = jnp.maximum(y, 0.0)
    return y


if __name__ == "__main__":
    key = jax.random.PRNGKey(0)
    key, kx = jax.random.split(key)
    x1 = jax.random.normal(kx, (1, 1, H_IN, W_IN), jnp.float32)  # torch.randn(1,1,10,10)

    weights, biases = init_params(key)
    wb = pack_params(weights, biases)

    out = conv_chain_nchw(x1, wb)
    out = jax.block_until_ready(out)

    assert out.shape == (1, C_OUT, H_OUT, W_OUT), out.shape

    ref = _reference(x1, weights, biases)
    assert jnp.allclose(out, ref, atol=1e-4, rtol=1e-4), float(jnp.max(jnp.abs(out - ref)))

    print("KERNEL_OK")
</pallas_src>

<mosaic_0001>
module attributes {stable_mosaic.version = 11 : i64} {
  func.func @_conv_chain_kernel(%arg0: memref<1x100xf32, #tpu.memory_space<vmem>>, %arg1: memref<112x128xf32, #tpu.memory_space<vmem>>, %arg2: memref<15x128xf32, #tpu.memory_space<vmem>>, %arg3: memref<96x256xf32, #tpu.memory_space<vmem>>) attributes {dimension_semantics = [], scalar_prefetch = 0 : i64, scratch_operands = 1 : i64, tpu.core_type = #tpu.core_type<tc>} {
    %cst = arith.constant 0.000000e+00 : f32
    %0 = vector.broadcast %cst : f32 to vector<96x256xf32>
    %c0 = arith.constant 0 : index
    %c0_0 = arith.constant 0 : index
    %1 = vector.load %arg3[%c0, %c0_0] : memref<96x256xf32, #tpu.memory_space<vmem>>, vector<96x256xf32>
    tpu.vector_store %arg3[%c0, %c0_0], %0 {strides = array<i32>} : memref<96x256xf32, #tpu.memory_space<vmem>>, vector<96x256xf32>,
    %cst_1 = arith.constant 1.000000e+00 : f32
    %2 = vector.broadcast %cst_1 : f32 to vector<1x128xf32>
    %c0_2 = arith.constant 0 : index
    %c0_3 = arith.constant 0 : index
    %3 = vector.load %arg3[%c0_2, %c0_3] : memref<96x256xf32, #tpu.memory_space<vmem>>, vector<1x128xf32>
    tpu.vector_store %arg3[%c0_2, %c0_3], %2 {strides = array<i32>} : memref<96x256xf32, #tpu.memory_space<vmem>>, vector<1x128xf32>,
    %c0_4 = arith.constant 0 : index
    %c0_5 = arith.constant 0 : index
    %4 = vector.load %arg0[%c0_4, %c0_5] : memref<1x100xf32, #tpu.memory_space<vmem>>, vector<1x100xf32>
    %c1 = arith.constant 1 : index
    %c0_6 = arith.constant 0 : index
    %5 = vector.load %arg3[%c1, %c0_6] : memref<96x256xf32, #tpu.memory_space<vmem>>, vector<1x100xf32>
    tpu.vector_store %arg3[%c1, %c0_6], %4 {strides = array<i32>} : memref<96x256xf32, #tpu.memory_space<vmem>>, vector<1x100xf32>,
    %c1_7 = arith.constant 1 : index
    %c1_8 = arith.constant 1 : index
    %6 = vector.load %arg3[%c1_7, %c1_8] : memref<96x256xf32, #tpu.memory_space<vmem>>, vector<1x128xf32>
    %c2 = arith.constant 2 : index
    %c0_9 = arith.constant 0 : index
    %7 = vector.load %arg3[%c2, %c0_9] : memref<96x256xf32, #tpu.memory_space<vmem>>, vector<1x128xf32>
    tpu.vector_store %arg3[%c2, %c0_9], %6 {strides = array<i32>} : memref<96x256xf32, #tpu.memory_space<vmem>>, vector<1x128xf32>,
    %c1_10 = arith.constant 1 : index
    %c10 = arith.constant 10 : index
    %8 = vector.load %arg3[%c1_10, %c10] : memref<96x256xf32, #tpu.memory_space<vmem>>, vector<1x128xf32>
    %c3 = arith.constant 3 : index
    %c0_11 = arith.constant 0 : index
    %9 = vector.load %arg3[%c3, %c0_11] : memref<96x256xf32, #tpu.memory_space<vmem>>, vector<1x128xf32>
    tpu.vector_store %arg3[%c3, %c0_11], %8 {strides = array<i32>} : memref<96x256xf32, #tpu.memory_space<vmem>>, vector<1x128xf32>,
    %c1_12 = arith.constant 1 : index
    %c11 = arith.constant 11 : index
    %10 = vector.load %arg3[%c1_12, %c11] : memref<96x256xf32, #tpu.memory_space<vmem>>, vector<1x128xf32>
    %c4 = arith.constant 4 : index
    %c0_13 = arith.constant 0 : index
    %11 = vector.load %arg3[%c4, %c0_13] : memref<96x256xf32, #tpu.memory_space<vmem>>, vector<1x128xf32>
    tpu.vector_store %arg3[%c4, %c0_13], %10 {strides = array<i32>} : memref<96x256xf32, #tpu.memory_space<vmem>>, vector<1x128xf32>,
    %c0_14 = arith.constant 0 : index
    %c0_15 = arith.constant 0 : index
    %12 = vector.load %arg1[%c0_14, %c0_15] : memref<112x128xf32, #tpu.memory_space<vmem>>, vector<3x8xf32>
    %c0_16 = arith.constant 0 : index
    %c0_17 = arith.constant 0 : index
    %13 = vector.load %arg3[%c0_16, %c0_17] : memref<96x256xf32, #tpu.memory_space<vmem>>, vector<8x128xf32>
    %cst_18 = arith.constant dense<0.000000e+00> : vector<3x128xf32>
    %14 = tpu.matmul %12, %13, %cst_18 {dimension_numbers = #tpu.dot_dimension_numbers<[1], [0], [0], [1], [0, 0, 1, 1], [], []>} : vector<3x8xf32>, vector<8x128xf32>, vector<3x128xf32> -> vector<3x128xf32>
    %cst_19 = arith.constant 0.000000e+00 : f32
    %15 = vector.broadcast %cst_19 : f32 to vector<3x128xf32>
    %16 = arith.maximumf %14, %15 : vector<3x128xf32>
    %c1_20 = arith.constant 1 : index
    %c0_21 = arith.constant 0 : index
    %17 = vector.load %arg3[%c1_20, %c0_21] : memref<96x256xf32, #tpu.memory_space<vmem>>, vector<3x128xf32>
    tpu.vector_store %arg3[%c1_20, %c0_21], %16 {strides = array<i32>} : memref<96x256xf32, #tpu.memory_space<vmem>>, vector<3x128xf32>,
    %c1_22 = arith.constant 1 : index
    %c1_23 = arith.constant 1 : index
    %18 = vector.load %arg3[%c1_22, %c1_23] : memref<96x256xf32, #tpu.memory_space<vmem>>, vector<3x128xf32>
    %c4_24 = arith.constant 4 : index
    %c0_25 = arith.constant 0 : index
    %19 = vector.load %arg3[%c4_24, %c0_25] : memref<96x256xf32, #tpu.memory_space<vmem>>, vector<3x128xf32>
    tpu.vector_store %arg3[%c4_24, %c0_25], %18 {strides = array<i32>} : memref<96x256xf32, #tpu.memory_space<vmem>>, vector<3x128xf32>,
    %c1_26 = arith.constant 1 : index
    %c10_27 = arith.constant 10 : index
    %20 = vector.load %arg3[%c1_26, %c10_27] : memref<96x256xf32, #tpu.memory_space<vmem>>, vector<3x128xf32>
    %c7 = arith.constant 7 : index
    %c0_28 = arith.constant 0 : index
    %21 = vector.load %arg3[%c7, %c0_28] : memref<96x256xf32, #tpu.memory_space<vmem>>, vector<3x128xf32>
    tpu.vector_store %arg3[%c7, %c0_28], %20 {strides = array<i32>} : memref<96x256xf32, #tpu.memory_space<vmem>>, vector<3x128xf32>,
    %c1_29 = arith.constant 1 : index
    %c11_30 = arith.constant 11 : index
    %22 = vector.load %arg3[%c1_29, %c11_30] : memref<96x256xf32, #tpu.memory_space<vmem>>, vector<3x128xf32>
    %c10_31 = arith.constant 10 : index
    %c0_32 = arith.constant 0 : index
    %23 = vector.load %arg3[%c10_31, %c0_32] : memref<96x256xf32, #tpu.memory_space<vmem>>, vector<3x128xf32>
    tpu.vector_store %arg3[%c10_31, %c0_32], %22 {strides = array<i32>} : memref<96x256xf32, #tpu.memory_space<vmem>>, vector<3x128xf32>,
    %c16 = arith.constant 16 : index
    %c0_33 = arith.constant 0 : index
    %24 = vector.load %arg1[%c16, %c0_33] : memref<112x128xf32, #tpu.memory_space<vmem>>, vector<5x16xf32>
    %c0_34 = arith.constant 0 : index
    %c0_35 = arith.constant 0 : index
    %25 = vector.load %arg3[%c0_34, %c0_35] : memref<96x256xf32, #tpu.memory_space<vmem>>, vector<16x128xf32>
    %cst_36 = arith.constant dense<0.000000e+00> : vector<5x128xf32>
    %26 = tpu.matmul %24, %25, %cst_36 {dimension_numbers = #tpu.dot_dimension_numbers<[1], [0], [0], [1], [0, 0, 1, 1], [], []>} : vector<5x16xf32>, vector<16x128xf32>, vector<5x128xf32> -> vector<5x128xf32>
    %cst_37 = arith.constant 0.000000e+00 : f32
    %27 = vector.broadcast %cst_37 : f32 to vector<5x128xf32>
    %28 = arith.maximumf %26, %27 : vector<5x128xf32>
    %c1_38 = arith.constant 1 : index
    %c0_39 = arith.constant 0 : index
    %29 = vector.load %arg3[%c1_38, %c0_39] : memref<96x256xf32, #tpu.memory_space<vmem>>, vector<5x128xf32>
    tpu.vector_store %arg3[%c1_38, %c0_39], %28 {strides = array<i32>} : memref<96x256xf32, #tpu.memory_space<vmem>>, vector<5x128xf32>,
    %c1_40 = arith.constant 1 : index
    %c1_41 = arith.constant 1 : index
    %30 = vector.load %arg3[%c1_40, %c1_41] : memref<96x256xf32, #tpu.memory_space<vmem>>, vector<5x128xf32>
    %c6 = arith.constant 6 : index
    %c0_42 = arith.constant 0 : index
    %31 = vector.load %arg3[%c6, %c0_42] : memref<96x256xf32, #tpu.memory_space<vmem>>, vector<5x128xf32>
    tpu.vector_store %arg3[%c6, %c0_42], %30 {strides = array<i32>} : memref<96x256xf32, #tpu.memory_space<vmem>>, vector<5x128xf32>,
    %c1_43 = arith.constant 1 : index
    %c2_44 = arith.constant 2 : index
    %32 = vector.load %arg3[%c1_43, %c2_44] : memref<96x256xf32, #tpu.memory_space<vmem>>, vector<5x128xf32>
    %c11_45 = arith.constant 11 : index
    %c0_46 = arith.constant 0 : index
    %33 = vector.load %arg3[%c11_45, %c0_46] : memref<96x256xf32, #tpu.memory_space<vmem>>, vector<5x128xf32>
    tpu.vector_store %arg3[%c11_45, %c0_46], %32 {strides = array<i32>} : memref<96x256xf32, #tpu.memory_space<vmem>>, vector<5x128xf32>,
    %c1_47 = arith.constant 1 : index
    %c10_48 = arith.constant 10 : index
    %34 = vector.load %arg3[%c1_47, %c10_48] : memref<96x256xf32, #tpu.memory_space<vmem>>, vector<5x128xf32>
    %c16_49 = arith.constant 16 : index
    %c0_50 = arith.constant 0 : index
    %35 = vector.load %arg3[%c16_49, %c0_50] : memref<96x256xf32, #tpu.memory_space<vmem>>, vector<5x128xf32>
    tpu.vector_store %arg3[%c16_49, %c0_50], %34 {strides = array<i32>} : memref<96x256xf32, #tpu.memory_space<vmem>>, vector<5x128xf32>,
    %c1_51 = arith.constant 1 : index
    %c11_52 = arith.constant 11 : index
    %36 = vector.load %arg3[%c1_51, %c11_52] : memref<96x256xf32, #tpu.memory_space<vmem>>, vector<5x128xf32>
    %c21 = arith.constant 21 : index
    %c0_53 = arith.constant 0 : index
    %37 = vector.load %arg3[%c21, %c0_53] : memref<96x256xf32, #tpu.memory_space<vmem>>, vector<5x128xf32>
    tpu.vector_store %arg3[%c21, %c0_53], %36 {strides = array<i32>} : memref<96x256xf32, #tpu.memory_space<vmem>>, vector<5x128xf32>,
    %c1_54 = arith.constant 1 : index
    %c12 = arith.constant 12 : index
    %38 = vector.load %arg3[%c1_54, %c12] : memref<96x256xf32, #tpu.memory_space<vmem>>, vector<5x128xf32>
    %c26 = arith.constant 26 : index
    %c0_55 = arith.constant 0 : index
    %39 = vector.load %arg3[%c26, %c0_55] : memref<96x256xf32, #tpu.memory_space<vmem>>, vector<5x128xf32>
    tpu.vector_store %arg3[%c26, %c0_55], %38 {strides = array<i32>} : memref<96x256xf32, #tpu.memory_space<vmem>>, vector<5x128xf32>,
    %c1_56 = arith.constant 1 : index
    %c20 = arith.constant 20 : index
    %40 = vector.load %arg3[%c1_56, %c20] : memref<96x256xf32, #tpu.memory_space<vmem>>, vector<5x128xf32>
    %c31 = arith.constant 31 : index
    %c0_57 = arith.constant 0 : index
    %41 = vector.load %arg3[%c31, %c0_57] : memref<96x256xf32, #tpu.memory_space<vmem>>, vector<5x128xf32>
    tpu.vector_store %arg3[%c31, %c0_57], %40 {strides = array<i32>} : memref<96x256xf32, #tpu.memory_space<vmem>>, vector<5x128xf32>,
    %c1_58 = arith.constant 1 : index
    %c21_59 = arith.constant 21 : index
    %42 = vector.load %arg3[%c1_58, %c21_59] : memref<96x256xf32, #tpu.memory_space<vmem>>, vector<5x128xf32>
    %c36 = arith.constant 36 : index
    %c0_60 = arith.constant 0 : index
    %43 = vector.load %arg3[%c36, %c0_60] : memref<96x256xf32, #tpu.memory_space<vmem>>, vector<5x128xf32>
    tpu.vector_store %arg3[%c36, %c0_60], %42 {strides = array<i32>} : memref<96x256xf32, #tpu.memory_space<vmem>>, vector<5x128xf32>,
    %c1_61 = arith.constant 1 : index
    %c22 = arith.constant 22 : index
    %44 = vector.load %arg3[%c1_61, %c22] : memref<96x256xf32, #tpu.memory_space<vmem>>, vector<5x128xf32>
    %c41 = arith.constant 41 : index
    %c0_62 = arith.constant 0 : index
    %45 = vector.load %arg3[%c41, %c0_62] : memref<96x256xf32, #tpu.memory_space<vmem>>, vector<5x128xf32>
    tpu.vector_store %arg3[%c41, %c0_62], %44 {strides = array<i32>} : memref<96x256xf32, #tpu.memory_space<vmem>>, vector<5x128xf32>,
    %c32 = arith.constant 32 : index
    %c0_63 = arith.constant 0 : index
    %46 = vector.load %arg1[%c32, %c0_63] : memref<112x128xf32, #tpu.memory_space<vmem>>, vector<7x48xf32>
    %c0_64 = arith.constant 0 : index
    %c0_65 = arith.constant 0 : index
    %47 = vector.load %arg3[%c0_64, %c0_65] : memref<96x256xf32, #tpu.memory_space<vmem>>, vector<48x128xf32>
    %cst_66 = arith.constant dense<0.000000e+00> : vector<7x128xf32>
    %48 = tpu.matmul %46, %47, %cst_66 {dimension_numbers = #tpu.dot_dimension_numbers<[1], [0], [0], [1], [0, 0, 1, 1], [], []>} : vector<7x48xf32>, vector<48x128xf32>, vector<7x128xf32> -> vector<7x128xf32>
    %cst_67 = arith.constant 0.000000e+00 : f32
    %49 = vector.broadcast %cst_67 : f32 to vector<7x128xf32>
    %50 = arith.maximumf %48, %49 : vector<7x128xf32>
    %c1_68 = arith.constant 1 : index
    %c0_69 = arith.constant 0 : index
    %51 = vector.load %arg3[%c1_68, %c0_69] : memref<96x256xf32, #tpu.memory_space<vmem>>, vector<7x128xf32>
    tpu.vector_store %arg3[%c1_68, %c0_69], %50 {strides = array<i32>} : memref<96x256xf32, #tpu.memory_space<vmem>>, vector<7x128xf32>,
    %c1_70 = arith.constant 1 : index
    %c1_71 = arith.constant 1 : index
    %52 = vector.load %arg3[%c1_70, %c1_71] : memref<96x256xf32, #tpu.memory_space<vmem>>, vector<7x128xf32>
    %c8 = arith.constant 8 : index
    %c0_72 = arith.constant 0 : index
    %53 = vector.load %arg3[%c8, %c0_72] : memref<96x256xf32, #tpu.memory_space<vmem>>, vector<7x128xf32>
    tpu.vector_store %arg3[%c8, %c0_72], %52 {strides = array<i32>} : memref<96x256xf32, #tpu.memory_space<vmem>>, vector<7x128xf32>,
    %c1_73 = arith.constant 1 : index
    %c10_74 = arith.constant 10 : index
    %54 = vector.load %arg3[%c1_73, %c10_74] : memref<96x256xf32, #tpu.memory_space<vmem>>, vector<7x128xf32>
    %c15 = arith.constant 15 : index
    %c0_75 = arith.constant 0 : index
    %55 = vector.load %arg3[%c15, %c0_75] : memref<96x256xf32, #tpu.memory_space<vmem>>, vector<7x128xf32>
    tpu.vector_store %arg3[%c15, %c0_75], %54 {strides = array<i32>} : memref<96x256xf32, #tpu.memory_space<vmem>>, vector<7x128xf32>,
    %c1_76 = arith.constant 1 : index
    %c11_77 = arith.constant 11 : index
    %56 = vector.load %arg3[%c1_76, %c11_77] : memref<96x256xf32, #tpu.memory_space<vmem>>, vector<7x128xf32>
    %c22_78 = arith.constant 22 : index
    %c0_79 = arith.constant 0 : index
    %57 = vector.load %arg3[%c22_78, %c0_79] : memref<96x256xf32, #tpu.memory_space<vmem>>, vector<7x128xf32>
    tpu.vector_store %arg3[%c22_78, %c0_79], %56 {strides = array<i32>} : memref<96x256xf32, #tpu.memory_space<vmem>>, vector<7x128xf32>,
    %c48 = arith.constant 48 : index
    %c0_80 = arith.constant 0 : index
    %58 = vector.load %arg1[%c48, %c0_80] : memref<112x128xf32, #tpu.memory_space<vmem>>, vector<9x32xf32>
    %c0_81 = arith.constant 0 : index
    %c0_82 = arith.constant 0 : index
    %59 = vector.load %arg3[%c0_81, %c0_82] : memref<96x256xf32, #tpu.memory_space<vmem>>, vector<32x128xf32>
    %cst_83 = arith.constant dense<0.000000e+00> : vector<9x128xf32>
    %60 = tpu.matmul %58, %59, %cst_83 {dimension_numbers = #tpu.dot_dimension_numbers<[1], [0], [0], [1], [0, 0, 1, 1], [], []>} : vector<9x32xf32>, vector<32x128xf32>, vector<9x128xf32> -> vector<9x128xf32>
    %cst_84 = arith.constant 0.000000e+00 : f32
    %61 = vector.broadcast %cst_84 : f32 to vector<9x128xf32>
    %62 = arith.maximumf %60, %61 : vector<9x128xf32>
    %c1_85 = arith.constant 1 : index
    %c0_86 = arith.constant 0 : index
    %63 = vector.load %arg3[%c1_85, %c0_86] : memref<96x256xf32, #tpu.memory_space<vmem>>, vector<9x128xf32>
    tpu.vector_store %arg3[%c1_85, %c0_86], %62 {strides = array<i32>} : memref<96x256xf32, #tpu.memory_space<vmem>>, vector<9x128xf32>,
    %c1_87 = arith.constant 1 : index
    %c1_88 = arith.constant 1 : index
    %64 = vector.load %arg3[%c1_87, %c1_88] : memref<96x256xf32, #tpu.memory_space<vmem>>, vector<9x128xf32>
    %c10_89 = arith.constant 10 : index
    %c0_90 = arith.constant 0 : index
    %65 = vector.load %arg3[%c10_89, %c0_90] : memref<96x256xf32, #tpu.memory_space<vmem>>, vector<9x128xf32>
    tpu.vector_store %arg3[%c10_89, %c0_90], %64 {strides = array<i32>} : memref<96x256xf32, #tpu.memory_space<vmem>>, vector<9x128xf32>,
    %c1_91 = arith.constant 1 : index
    %c2_92 = arith.constant 2 : index
    %66 = vector.load %arg3[%c1_91, %c2_92] : memref<96x256xf32, #tpu.memory_space<vmem>>, vector<9x128xf32>
    %c19 = arith.constant 19 : index
    %c0_93 = arith.constant 0 : index
    %67 = vector.load %arg3[%c19, %c0_93] : memref<96x256xf32, #tpu.memory_space<vmem>>, vector<9x128xf32>
    tpu.vector_store %arg3[%c19, %c0_93], %66 {strides = array<i32>} : memref<96x256xf32, #tpu.memory_space<vmem>>, vector<9x128xf32>,
    %c1_94 = arith.constant 1 : index
    %c10_95 = arith.constant 10 : index
    %68 = vector.load %arg3[%c1_94, %c10_95] : memref<96x256xf32, #tpu.memory_space<vmem>>, vector<9x128xf32>
    %c28 = arith.constant 28 : index
    %c0_96 = arith.constant 0 : index
    %69 = vector.load %arg3[%c28, %c0_96] : memref<96x256xf32, #tpu.memory_space<vmem>>, vector<9x128xf32>
    tpu.vector_store %arg3[%c28, %c0_96], %68 {strides = array<i32>} : memref<96x256xf32, #tpu.memory_space<vmem>>, vector<9x128xf32>,
    %c1_97 = arith.constant 1 : index
    %c11_98 = arith.constant 11 : index
    %70 = vector.load %arg3[%c1_97, %c11_98] : memref<96x256xf32, #tpu.memory_space<vmem>>, vector<9x128xf32>
    %c37 = arith.constant 37 : index
    %c0_99 = arith.constant 0 : index
    %71 = vector.load %arg3[%c37, %c0_99] : memref<96x256xf32, #tpu.memory_space<vmem>>, vector<9x128xf32>
    tpu.vector_store %arg3[%c37, %c0_99], %70 {strides = array<i32>} : memref<96x256xf32, #tpu.memory_space<vmem>>, vector<9x128xf32>,
    %c1_100 = arith.constant 1 : index
    %c12_101 = arith.constant 12 : index
    %72 = vector.load %arg3[%c1_100, %c12_101] : memref<96x256xf32, #tpu.memory_space<vmem>>, vector<9x128xf32>
    %c46 = arith.constant 46 : index
    %c0_102 = arith.constant 0 : index
    %73 = vector.load %arg3[%c46, %c0_102] : memref<96x256xf32, #tpu.memory_space<vmem>>, vector<9x128xf32>
    tpu.vector_store %arg3[%c46, %c0_102], %72 {strides = array<i32>} : memref<96x256xf32, #tpu.memory_space<vmem>>, vector<9x128xf32>,
    %c1_103 = arith.constant 1 : index
    %c20_104 = arith.constant 20 : index
    %74 = vector.load %arg3[%c1_103, %c20_104] : memref<96x256xf32, #tpu.memory_space<vmem>>, vector<9x128xf32>
    %c55 = arith.constant 55 : index
    %c0_105 = arith.constant 0 : index
    %75 = vector.load %arg3[%c55, %c0_105] : memref<96x256xf32, #tpu.memory_space<vmem>>, vector<9x128xf32>
    tpu.vector_store %arg3[%c55, %c0_105], %74 {strides = array<i32>} : memref<96x256xf32, #tpu.memory_space<vmem>>, vector<9x128xf32>,
    %c1_106 = arith.constant 1 : index
    %c21_107 = arith.constant 21 : index
    %76 = vector.load %arg3[%c1_106, %c21_107] : memref<96x256xf32, #tpu.memory_space<vmem>>, vector<9x128xf32>
    %c64 = arith.constant 64 : index
    %c0_108 = arith.constant 0 : index
    %77 = vector.load %arg3[%c64, %c0_108] : memref<96x256xf32, #tpu.memory_space<vmem>>, vector<9x128xf32>
    tpu.vector_store %arg3[%c64, %c0_108], %76 {strides = array<i32>} : memref<96x256xf32, #tpu.memory_space<vmem>>, vector<9x128xf32>,
    %c1_109 = arith.constant 1 : index
    %c22_110 = arith.constant 22 : index
    %78 = vector.load %arg3[%c1_109, %c22_110] : memref<96x256xf32, #tpu.memory_space<vmem>>, vector<9x128xf32>
    %c73 = arith.constant 73 : index
    %c0_111 = arith.constant 0 : index
    %79 = vector.load %arg3[%c73, %c0_111] : memref<96x256xf32, #tpu.memory_space<vmem>>, vector<9x128xf32>
    tpu.vector_store %arg3[%c73, %c0_111], %78 {strides = array<i32>} : memref<96x256xf32, #tpu.memory_space<vmem>>, vector<9x128xf32>,
    %c64_112 = arith.constant 64 : index
    %c0_113 = arith.constant 0 : index
    %80 = vector.load %arg1[%c64_112, %c0_113] : memref<112x128xf32, #tpu.memory_space<vmem>>, vector<11x88xf32>
    %c0_114 = arith.constant 0 : index
    %c0_115 = arith.constant 0 : index
    %81 = vector.load %arg3[%c0_114, %c0_115] : memref<96x256xf32, #tpu.memory_space<vmem>>, vector<88x128xf32>
    %cst_116 = arith.constant dense<0.000000e+00> : vector<11x128xf32>
    %82 = tpu.matmul %80, %81, %cst_116 {dimension_numbers = #tpu.dot_dimension_numbers<[1], [0], [0], [1], [0, 0, 1, 1], [], []>} : vector<11x88xf32>, vector<88x128xf32>, vector<11x128xf32> -> vector<11x128xf32>
    %cst_117 = arith.constant 0.000000e+00 : f32
    %83 = vector.broadcast %cst_117 : f32 to vector<11x128xf32>
    %84 = arith.maximumf %82, %83 : vector<11x128xf32>
    %c1_118 = arith.constant 1 : index
    %c0_119 = arith.constant 0 : index
    %85 = vector.load %arg3[%c1_118, %c0_119] : memref<96x256xf32, #tpu.memory_space<vmem>>, vector<11x128xf32>
    tpu.vector_store %arg3[%c1_118, %c0_119], %84 {strides = array<i32>} : memref<96x256xf32, #tpu.memory_space<vmem>>, vector<11x128xf32>,
    %c1_120 = arith.constant 1 : index
    %c1_121 = arith.constant 1 : index
    %86 = vector.load %arg3[%c1_120, %c1_121] : memref<96x256xf32, #tpu.memory_space<vmem>>, vector<11x128xf32>
    %c12_122 = arith.constant 12 : index
    %c0_123 = arith.constant 0 : index
    %87 = vector.load %arg3[%c12_122, %c0_123] : memref<96x256xf32, #tpu.memory_space<vmem>>, vector<11x128xf32>
    tpu.vector_store %arg3[%c12_122, %c0_123], %86 {strides = array<i32>} : memref<96x256xf32, #tpu.memory_space<vmem>>, vector<11x128xf32>,
    %c1_124 = arith.constant 1 : index
    %c10_125 = arith.constant 10 : index
    %88 = vector.load %arg3[%c1_124, %c10_125] : memref<96x256xf32, #tpu.memory_space<vmem>>, vector<11x128xf32>
    %c23 = arith.constant 23 : index
    %c0_126 = arith.constant 0 : index
    %89 = vector.load %arg3[%c23, %c0_126] : memref<96x256xf32, #tpu.memory_space<vmem>>, vector<11x128xf32>
    tpu.vector_store %arg3[%c23, %c0_126], %88 {strides = array<i32>} : memref<96x256xf32, #tpu.memory_space<vmem>>, vector<11x128xf32>,
    %c1_127 = arith.constant 1 : index
    %c11_128 = arith.constant 11 : index
    %90 = vector.load %arg3[%c1_127, %c11_128] : memref<96x256xf32, #tpu.memory_space<vmem>>, vector<11x128xf32>
    %c34 = arith.constant 34 : index
    %c0_129 = arith.constant 0 : index
    %91 = vector.load %arg3[%c34, %c0_129] : memref<96x256xf32, #tpu.memory_space<vmem>>, vector<11x128xf32>
    tpu.vector_store %arg3[%c34, %c0_129], %90 {strides = array<i32>} : memref<96x256xf32, #tpu.memory_space<vmem>>, vector<11x128xf32>,
    %c80 = arith.constant 80 : index
    %c0_130 = arith.constant 0 : index
    %92 = vector.load %arg1[%c80, %c0_130] : memref<112x128xf32, #tpu.memory_space<vmem>>, vector<13x48xf32>
    %c0_131 = arith.constant 0 : index
    %c0_132 = arith.constant 0 : index
    %93 = vector.load %arg3[%c0_131, %c0_132] : memref<96x256xf32, #tpu.memory_space<vmem>>, vector<48x128xf32>
    %cst_133 = arith.constant dense<0.000000e+00> : vector<13x128xf32>
    %94 = tpu.matmul %92, %93, %cst_133 {dimension_numbers = #tpu.dot_dimension_numbers<[1], [0], [0], [1], [0, 0, 1, 1], [], []>} : vector<13x48xf32>, vector<48x128xf32>, vector<13x128xf32> -> vector<13x128xf32>
    %cst_134 = arith.constant 0.000000e+00 : f32
    %95 = vector.broadcast %cst_134 : f32 to vector<13x128xf32>
    %96 = arith.maximumf %94, %95 : vector<13x128xf32>
    %c1_135 = arith.constant 1 : index
    %c0_136 = arith.constant 0 : index
    %97 = vector.load %arg3[%c1_135, %c0_136] : memref<96x256xf32, #tpu.memory_space<vmem>>, vector<13x128xf32>
    tpu.vector_store %arg3[%c1_135, %c0_136], %96 {strides = array<i32>} : memref<96x256xf32, #tpu.memory_space<vmem>>, vector<13x128xf32>,
    %c96 = arith.constant 96 : index
    %c0_137 = arith.constant 0 : index
    %98 = vector.load %arg1[%c96, %c0_137] : memref<112x128xf32, #tpu.memory_space<vmem>>, vector<15x16xf32>
    %c0_138 = arith.constant 0 : index
    %c0_139 = arith.constant 0 : index
    %99 = vector.load %arg3[%c0_138, %c0_139] : memref<96x256xf32, #tpu.memory_space<vmem>>, vector<16x128xf32>
    %cst_140 = arith.constant dense<0.000000e+00> : vector<15x128xf32>
    %100 = tpu.matmul %98, %99, %cst_140 {dimension_numbers = #tpu.dot_dimension_numbers<[1], [0], [0], [1], [0, 0, 1, 1], [], []>} : vector<15x16xf32>, vector<16x128xf32>, vector<15x128xf32> -> vector<15x128xf32>
    %cst_141 = arith.constant 0.000000e+00 : f32
    %101 = vector.broadcast %cst_141 : f32 to vector<15x128xf32>
    %102 = arith.maximumf %100, %101 : vector<15x128xf32>
    %c0_142 = arith.constant 0 : index
    %c0_143 = arith.constant 0 : index
    %103 = vector.load %arg2[%c0_142, %c0_143] : memref<15x128xf32, #tpu.memory_space<vmem>>, vector<15x128xf32>
    tpu.vector_store %arg2[%c0_142, %c0_143], %102 {strides = array<i32>} : memref<15x128xf32, #tpu.memory_space<vmem>>, vector<15x128xf32>,
    return
  }
}

</mosaic_0001>

<bundles_post_ra>
// kernel: conv_chain_nchw.1
= control target key start
LH: loop header
LB: loop body
LE: loop exit
PB: predicated region body
PF: predicated region fallthrough
CT: control target
= control target key end

     0   :  { %7 = vsyncpa [#allocation4], 0  ;;  %s1479_s9 = smov [#allocation3]   ;;  %s1690_s0 = inlined_call_operand.vmem [shape: f32[1,100], index: 0, kind: input, shape index: {}]   ;;  %s1691_s1 = inlined_call_operand.hbm [shape: f32[112,128], index: 1, kind: input, shape index: {}]   ;;  %s1692_s2 = inlined_call_operand.vmem [shape: f32[15,128], index: 2, kind: output, shape index: {}]  }
   0x1   :  { %s15_s10 = sshll.u32 %s1479_s9, 4  ;;  %s1455_s13 = scalar_lea.hbm %s1691_s1, 1792  ;;  %s16_s10 = int_to_ptr.vmem [resolvable:$true] %s15_s10 }
   0x2   :  { %p1456_p0 = scmp.ne.s32.totalorder %s1691_s1, %s1455_s13  ;;  %p1459_p1 = scmp.lt.u32.totalorder %s1455_s13, %s1691_s1 }
   0x4   :  { %p1461_p2 = pnand %p1459_p1, %p1456_p0 }
   0x6   :  { %1464 = shalt.err (!%p1461_p2)
}
   0x7   :  { %s1465_s18 = scalar_lea.vmem %s16_s10, 1792  ;;  %p1470_p4 = scmp.lt.s32.totalorder %s16_s10, %s16_s10 }
   0x8   :  { %p1466_p3 = scmp.ne.s32.totalorder %s16_s10, %s1465_s18  ;;  %p1471_p5 = scmp.lt.s32.totalorder %s1465_s18, %s1465_s18 }
   0xa   :  { %p1472_p6 = por %p1471_p5, %p1470_p4 }
   0xc   :  { %p1473_p7 = pnand %p1472_p6, %p1466_p3 }
   0xe   :  { %1476 = shalt.err (!%p1473_p7)
}
   0xf   :  { %s1480_s19 = smov 128   ;;  %s1481_s20 = smov 8  }
  0x10   :  { %21 = dma.hbm_to_vmem [thread:$0]  %s1691_s1, 1792, %s16_s10, [#allocation4], %s1480_s19, %s1480_s19, %s1481_s20  }
  0x11   :  { %1477 = dma.done.wait [#allocation4], 1792  }
  0x12   :  { %1478 = vsyncadd [#allocation4], 4294965504  ;;  %v1482_v0 = vmov 0.0   ;;  %vm51_vm0 = vcmask 811008   ;;  %v50_v1 = vld [vmem:[%s1690_s0] sm:$0x1] }
  0x13   :  { %25 = vst [vmem:[#allocation2] sm:$0xff] %v1482_v0  ;;  %26 = vst [vmem:[#allocation2 + $0x8] sm:$0xff] %v1482_v0  ;;  %1299 = vmatprep.subr.mxu0 %v1482_v0  ;;  %v1483_v3 = vmov 1.0   ;;  %s1484_s1 = smov 118   ;;  %s1485_s25 = smov 127   ;;  %vm1486_vm1 = vmmov 0  }
  0x14   :  { %27 = vst [vmem:[#allocation2 + $0x10] sm:$0xff] %v1482_v0  ;;  %28 = vst [vmem:[#allocation2 + $0x18] sm:$0xff] %v1482_v0  ;;  %1301 = vmatprep.mubr.msk.f32.mxu0 %vm1486_vm1, %v1482_v0  ;;  %1308 = vmatprep.mubr.msk.f32.mxu1 %vm1486_vm1, %v1482_v0  ;;  %s1487_s0 = smov 117   ;;  %vm73_vm2 = vcmask 965632   ;;  %vm61_vm3 = vcmask 1039360   ;;  %vm85_vm4 = vcmask 957440  }
  0x15   :  { %29 = vst [vmem:[#allocation2 + $0x20] sm:$0xff] %v1482_v0  ;;  %31 = vst [vmem:[#allocation2 + $0x30] sm:$0xff] %v1482_v0  ;;  %v89_v14 = vld [vmem:[#allocation3] sm:$0x7]  ;;  %vm91_vm5 = vcmask 64512   ;;  %v1488_v27 = vmov 0.0|0.0  }
  0x16   :  { %33 = vst [vmem:[#allocation2 + $0x40] sm:$0xff] %v1482_v0  ;;  %35 = vst [vmem:[#allocation2 + $0x50] sm:$0xff] %v1482_v0  ;;  %1384 = vmatprep.subr.bf16.mxu1 %v1488_v27  ;;  %v210_v45 = vld [vmem:[#allocation3 + $0x10] sm:$0x1f]  ;;  %vm1693_vm6 = vcmask 130048   ;;  %s1489_s26 = smov 126  }
  0x17   :  { %37 = vst [vmem:[#allocation2 + $0x60] sm:$0xff] %v1482_v0  ;;  %43 = vst [vmem:[#allocation2 + $0x90] sm:$0xff] %v1482_v0  ;;  %s1490_s27 = smov 116   ;;  %s1491_s28 = smov 108   ;;  %vm316_vm7 = vcmask 1031168   ;;  %vm357_vm8 = vcmask 949248  }
  0x18   :  { %45 = vst [vmem:[#allocation2 + $0xa0] sm:$0xff] %v1482_v0  ;;  %52 = vst.msk [vmem:[#allocation2 + $0x1] sm:$0x1] %vm51_vm0, %v50_v1  ;;  %s1492_s29 = smov 107   ;;  %s1493_s30 = smov 106   ;;  %vm371_vm9 = vcmask 883712  }
  0x19   :  { %49 = vst [vmem:[#allocation2] sm:$0x1] %v1483_v3  ;;  %vm386_vm10 = vcmask 875520   ;;  %vm399_vm11 = vcmask 867328   ;;  %vm410_vm12 = vcmask 392192   ;;  %vm536_vm13 = vcmask 261120  }
  0x1a   :  { %v66_v2 = vld [vmem:[#allocation2 + $0x9] ss:$0 sm:$0xff]  ;;  %vm622_vm14 = vcmask 1040384   ;;  %vm666_vm15 = vcmask 1041408   ;;  %vm695_vm0 = vcmask 1042432  }
  0x1b   :  { %71 = vrot.lane.b32.xlu1 %v66_v2, %s1484_s1  ;;  %59 = vrot.lane.b32.xlu0 %v66_v2, %s1485_s25  ;;  %v171_v16 = vld [vmem:[#allocation2 + $0x8] sm:$0xe] }
  0x1c   :  { %v175_v17 = vrot.slane %v171_v16, 5  ;;  %v184_v18 = vld [vmem:[#allocation2 + $0x8] sm:$0xe] }
  0x1d   :  { %v188_v19 = vrot.slane %v184_v18, 2  ;;  %v198_v20 = vld [vmem:[#allocation2 + $0x8] sm:$0xe] }
  0x1e   :  { %v202_v21 = vrot.slane %v198_v20, 7  ;;  %v293_v46 = vld [vmem:[#allocation2 + $0x8] sm:$0x3e] }
  0x1f   :  { %v65_v4 = vld [vmem:[#allocation2 + $0x1] ss:$0 sm:$0xff]  ;;  %v297_v47 = vrot.slane %v293_v46, 3  ;;  %v307_v48 = vld [vmem:[#allocation2 + $0x8] sm:$0x3e] }
  0x20   :  { %69 = vrot.lane.b32.xlu1 %v65_v4, %s1484_s1  ;;  %57 = vrot.lane.b32.xlu0 %v65_v4, %s1485_s25  ;;  %v311_v49 = vrot.slane %v307_v48, 6  ;;  %v321_v50 = vld [vmem:[#allocation2 + $0x8] sm:$0x3e] }
  0x21   :  { %v325_v51 = vrot.slane %v321_v50, 1  ;;  %v334_v52 = vld [vmem:[#allocation2 + $0x8] sm:$0x3e]  ;;  %v403_v50 = vld [vmem:[#allocation3 + $0x20] sm:$0x7f] }
  0x22   :  { %v338_v53 = vrot.slane %v334_v52, 4  ;;  %v348_v54 = vld [vmem:[#allocation2 + $0x8] sm:$0x3e] }
  0x23   :  { %v352_v55 = vrot.slane %v348_v54, 7  ;;  %v362_v56 = vld [vmem:[#allocation2 + $0x8] sm:$0x3e] }
  0x24   :  { %83 = vrot.lane.b32.xlu1 %v66_v2, %s1487_s0  ;;  %81 = vrot.lane.b32.xlu0 %v65_v4, %s1487_s0  ;;  %v366_v57 = vrot.slane %v362_v56, 2  ;;  %v377_v58 = vld [vmem:[#allocation2 + $0x8] sm:$0x3e] }
  0x25   :  { %v381_v59 = vrot.slane %v377_v58, 5  ;;  %v392_v60 = vld [vmem:[#allocation2 + $0x8] sm:$0x3e] }
  0x28   :  { %178 = vrot.lane.b32.xlu1 %v175_v17, %s1485_s25 }
  0x2c   :  { %191 = vrot.lane.b32.xlu1 %v188_v19, %s1484_s1 }
  0x30   :  { %205 = vrot.lane.b32.xlu1 %v202_v21, %s1487_s0 }
  0x34   :  { %300 = vrot.lane.b32.xlu1 %v297_v47, %s1485_s25 }
  0x38   :  { %314 = vrot.lane.b32.xlu1 %v311_v49, %s1489_s26 }
  0x3c   :  { %328 = vrot.lane.b32.xlu1 %v325_v51, %s1484_s1  ;;  %v490_v51 = vld [vmem:[#allocation2 + $0x8] sm:$0xfe] }
  0x3d   :  { %v494_v52 = vrot.slane %v490_v51, 1  ;;  %v806_v51 = vld [vmem:[#allocation2 + $0x18] sm:$0x3] }
  0x40   :  { %341 = vrot.lane.b32.xlu1 %v338_v53, %s1487_s0  ;;  %v503_v53 = vld [vmem:[#allocation2 + $0x8] sm:$0xfe] }
  0x41   :  { %v507_v54 = vrot.slane %v503_v53, 2  ;;  %v816_v53 = vrot.slane %v806_v51, 1 }
  0x44   :  { %355 = vrot.lane.b32.xlu1 %v352_v55, %s1490_s27  ;;  %v517_v55 = vld [vmem:[#allocation2 + $0x8] sm:$0xfe] }
  0x45   :  { %v521_v56 = vrot.slane %v517_v55, 3  ;;  %v833_v55 = vld [vmem:[#allocation2 + $0x8] sm:$0xfe] }
  0x48   :  { %369 = vrot.lane.b32.xlu1 %v366_v57, %s1491_s28 }
  0x4c   :  { %384 = vrot.lane.b32.xlu1 %v381_v59, %s1492_s29 }
  0x50   :  { %397 = vrot.lane.b32.xlu1 %v392_v60, %s1493_s30 }
  0x54   :  { %497 = vrot.lane.b32.xlu1 %v494_v52, %s1485_s25 }
  0x58   :  { %510 = vrot.lane.b32.xlu1 %v507_v54, %s1484_s1 }
  0x5c   :  { %524 = vrot.lane.b32.xlu1 %v521_v56, %s1487_s0  ;;  %v835_v56 = vld [vmem:[#allocation2 + $0x18] sm:$0x3] }
  0x8d   :  { %v72_v5 = vpop.permute.xlu1 %71  ;;  %v60_v6 = vpop.permute.xlu0 %59 }
  0x92   :  { %v70_v7 = vpop.permute.xlu1 %69  ;;  %v58_v8 = vpop.permute.xlu0 %57 }
  0x93   :  { %v74_v9 = vsel %vm73_vm2, %v70_v7, %v72_v5  ;;  %v62_v10 = vsel %vm61_vm3, %v58_v8, %v60_v6 }
  0x94   :  { %76 = vst [vmem:[#allocation2 + $0x3] sm:$0x1] %v74_v9  ;;  %64 = vst [vmem:[#allocation2 + $0x2] sm:$0x1] %v62_v10 }
  0x96   :  { %v84_v11 = vpop.permute.xlu1 %83  ;;  %v82_v12 = vpop.permute.xlu0 %81 }
  0x97   :  { %v86_v13 = vsel %vm85_vm4, %v82_v12, %v84_v11 }
  0x98   :  { %88 = vst [vmem:[#allocation2 + $0x4] sm:$0x1] %v86_v13 }
  0x9a   :  { %v179_v33 = vpop.permute.xlu1 %178 }
  0x9e   :  { %v192_v35 = vpop.permute.xlu1 %191 }
  0x9f   :  { %v90_v15 = vld [vmem:[#allocation2] sm:$0xff] }
  0xa0   :  { %1300 = vmatpush3.msra.mxu0 %v90_v15 }
  0xa1   :  { %1302 = vmatmul.mubr.msk.f32.vlgmr.msra.gmra.mrb[0].mxu0 %vm91_vm5, %v89_v14  ;;  %1387 = vmatprep.subr.bf16.mxu0 %v1488_v27  ;;  %vm753_vm5 = vcmask 1044480  }
  0xa2   :  { %1323 = vmatprep.mubr.msk.f32.mxu0 %vm1486_vm1, %v1482_v0  ;;  %v206_v39 = vpop.permute.xlu1 %205  ;;  %vm724_vm1 = vcmask 1043456  }
  0xa6   :  { %v301_v16 = vpop.permute.xlu1 %300 }
  0xaa   :  { %v315_v17 = vpop.permute.xlu1 %314 }
  0xae   :  { %v329_v18 = vpop.permute.xlu1 %328 }
  0xb2   :  { %v342_v21 = vpop.permute.xlu1 %341 }
 0x174   :  { %v161_v22 = vpop.f32.mrb[0].mxu0 }
 0x175   :  { %v165_v23 = vmax.f32 %v161_v22, 0.0  ;;  %v1303_v24 = vpop.f32.mrb[1].mxu0 }
 0x177   :  { %v167_v25 = vrot.slane %v165_v23, 7 }
 0x179   :  { %169 = vst [vmem:[#allocation2] sm:$0xe] %v167_v25  ;;  %v356_v25 = vpop.permute.xlu1 %355 }
 0x180   :  { %v170_v26 = vld [vmem:[#allocation2] sm:$0xe] }
 0x181   :  { %v174_v28 = vrot.slane %v170_v26, 5  ;;  %v183_v29 = vld [vmem:[#allocation2] sm:$0xe] }
 0x182   :  { %v187_v30 = vrot.slane %v183_v29, 2  ;;  %v197_v31 = vld [vmem:[#allocation2] sm:$0xe] }
 0x183   :  { %176 = vrot.lane.b32.xlu0 %v174_v28, %s1485_s25  ;;  %v201_v32 = vrot.slane %v197_v31, 7 }
 0x187   :  { %189 = vrot.lane.b32.xlu0 %v187_v30, %s1484_s1 }
 0x18b   :  { %203 = vrot.lane.b32.xlu0 %v201_v32, %s1487_s0 }
 0x1f5   :  { %v177_v34 = vpop.permute.xlu0 %176 }
 0x1f6   :  { %v180_v36 = vsel %vm61_vm3, %v177_v34, %v179_v33  ;;  %v370_v33 = vpop.permute.xlu1 %369 }
 0x1f7   :  { %182 = vst [vmem:[#allocation2] sm:$0x70] %v180_v36 }
 0x1f9   :  { %v190_v37 = vpop.permute.xlu0 %189 }
 0x1fa   :  { %v193_v38 = vsel %vm73_vm2, %v190_v37, %v192_v35  ;;  %v385_v37 = vpop.permute.xlu1 %384 }
 0x1fb   :  { %195 = vst [vmem:[#allocation2 + $0x10] ss:$-12 sps:$4 sm:$0x83] %v193_v38  }
 0x1fd   :  { %v204_v40 = vpop.permute.xlu0 %203 }
 0x1fe   :  { %v207_v41 = vsel %vm85_vm4, %v204_v40, %v206_v39 }
 0x1ff   :  { %209 = vst [vmem:[#allocation2 + $0x10] sm:$0x1c] %v207_v41  ;;  %v398_v41 = vpop.permute.xlu1 %397 }
 0x202   :  { %v211_v42 = vld [vmem:[#allocation2] sm:$0xff] }
 0x206   :  { %v212_v43 = vld [vmem:[#allocation2 + $0x10] sm:$0xff] }
 0x207   :  { %v1385_v44 = vpack.c.bf16 %v212_v43, %v211_v42 }
 0x209   :  { %1386 = vmatpush3.bf16.msra.mxu1 %v1385_v44 }
 0x20c   :  { %1309 = vmatmul.mubr.msk.f32.vlgmr.msra.gmra.mrb[0].mxu1 %vm1693_vm6, %v210_v45  ;;  %vm811_vm6 = vcmask 1046528  }
 0x2df   :  { %v283_v61 = vpop.f32.mrb[0].mxu1 }
 0x2e0   :  { %v287_v62 = vmax.f32 %v283_v61, 0.0  ;;  %v1310_v63 = vpop.f32.mrb[1].mxu1 }
 0x2e2   :  { %v289_v0 = vrot.slane %v287_v62, 7 }
 0x2e4   :  { %291 = vst [vmem:[#allocation2] sm:$0x3e] %v289_v0 }
 0x2eb   :  { %v292_v1 = vld [vmem:[#allocation2] sm:$0x3e] }
 0x2ec   :  { %v296_v2 = vrot.slane %v292_v1, 3  ;;  %v306_v3 = vld [vmem:[#allocation2] sm:$0x3e] }
 0x2ed   :  { %v310_v4 = vrot.slane %v306_v3, 6  ;;  %v320_v5 = vld [vmem:[#allocation2] sm:$0x3e]  ;;  %v631_v3 = vld [vmem:[#allocation2 + $0x8] sm:$0xfe] }
 0x2ee   :  { %298 = vrot.lane.b32.xlu0 %v296_v2, %s1485_s25  ;;  %v324_v6 = vrot.slane %v320_v5, 1  ;;  %v333_v7 = vld [vmem:[#allocation2] sm:$0x3e]  ;;  %v530_v2 = vld [vmem:[#allocation3 + $0x30] sm:$0xff]  ;;  %v639_v5 = vrot.slane %v631_v3, 7 }
 0x2ef   :  { %v337_v8 = vrot.slane %v333_v7, 4  ;;  %v347_v9 = vld [vmem:[#allocation2] sm:$0x3e]  ;;  %1334 = vmatprep.mubr.msk.f32.mxu1 %vm536_vm13, %v530_v2 }
 0x2f0   :  { %v351_v10 = vrot.slane %v347_v9, 7  ;;  %v361_v11 = vld [vmem:[#allocation2] sm:$0x3e]  ;;  %646 = vrot.lane.b32.xlu1 %v639_v5, %s1485_s25  ;;  %v661_v9 = vld [vmem:[#allocation2 + $0x18] sm:$0x3] }
 0x2f1   :  { %v365_v12 = vrot.slane %v361_v11, 2  ;;  %v376_v13 = vld [vmem:[#allocation2] sm:$0x3e]  ;;  %v671_v11 = vrot.slane %v661_v9, 6 }
 0x2f2   :  { %312 = vrot.lane.b32.xlu0 %v310_v4, %s1489_s26  ;;  %v380_v14 = vrot.slane %v376_v13, 5  ;;  %v391_v15 = vld [vmem:[#allocation2] sm:$0x3e]  ;;  %v633_v4 = vld [vmem:[#allocation2 + $0x18] sm:$0x3]  ;;  %v498_v13 = vpop.permute.xlu1 %497 }
 0x2f6   :  { %326 = vrot.lane.b32.xlu0 %v324_v6, %s1484_s1  ;;  %v642_v6 = vrot.slane %v633_v4, 7 }
 0x2f8   :  { %v643_v7 = vsel %vm622_vm14, %v639_v5, %v642_v6 }
 0x2f9   :  { %650 = vrot.lane.b32.xlu1 %v643_v7, %s1485_s25 }
 0x2fa   :  { %339 = vrot.lane.b32.xlu0 %v337_v8, %s1487_s0  ;;  %v659_v8 = vld [vmem:[#allocation2 + $0x8] sm:$0xfe] }
 0x2fe   :  { %353 = vrot.lane.b32.xlu0 %v351_v10, %s1490_s27  ;;  %v668_v10 = vrot.slane %v659_v8, 6 }
 0x300   :  { %675 = vrot.lane.b32.xlu1 %v668_v10, %s1489_s26 }
 0x302   :  { %367 = vrot.lane.b32.xlu0 %v365_v12, %s1491_s28  ;;  %v672_v12 = vsel %vm666_vm15, %v668_v10, %v671_v11 }
 0x304   :  { %679 = vrot.lane.b32.xlu1 %v672_v12, %s1489_s26 }
 0x306   :  { %382 = vrot.lane.b32.xlu0 %v380_v14, %s1492_s29 }
 0x30a   :  { %395 = vrot.lane.b32.xlu0 %v391_v15, %s1493_s30  ;;  %v511_v15 = vpop.permute.xlu1 %510 }
 0x360   :  { %v299_v19 = vpop.permute.xlu0 %298 }
 0x361   :  { %v302_v20 = vsel %vm61_vm3, %v299_v19, %v301_v16  ;;  %v525_v19 = vpop.permute.xlu1 %524 }
 0x362   :  { %304 = vst [vmem:[#allocation2 + $0x10] ss:$-12 sps:$4 sm:$0xc7] %v302_v20  }
 0x364   :  { %v313_v22 = vpop.permute.xlu0 %312 }
 0x365   :  { %v317_v23 = vsel %vm316_vm7, %v313_v22, %v315_v17 }
 0x366   :  { %319 = vst [vmem:[#allocation2 + $0x10] sm:$0xf8] %v317_v23 }
 0x368   :  { %v327_v24 = vpop.permute.xlu0 %326 }
 0x369   :  { %v330_v26 = vsel %vm73_vm2, %v327_v24, %v329_v18  ;;  %v404_v30 = vld [vmem:[#allocation2] sm:$0xff] }
 0x36a   :  { %332 = vst [vmem:[#allocation2 + $0x20] sm:$0x1f] %v330_v26 }
 0x36c   :  { %v340_v28 = vpop.permute.xlu0 %339 }
 0x36d   :  { %v343_v29 = vsel %vm85_vm4, %v340_v28, %v342_v21  ;;  %v405_v31 = vld [vmem:[#allocation2 + $0x10] sm:$0xff] }
 0x36e   :  { %345 = vst [vmem:[#allocation2 + $0x30] ss:$-12 sps:$4 sm:$0xe3] %v343_v29   ;;  %v1388_v32 = vpack.c.bf16 %v405_v31, %v404_v30  ;;  %v531_v29 = vld [vmem:[#allocation3 + $0x38] sm:$0x1] }
 0x36f   :  { %v688_v30 = vld [vmem:[#allocation2 + $0x8] sm:$0xfe] }
 0x370   :  { %1389 = vmatpush3.bf16.msra.mxu0 %v1388_v32  ;;  %v354_v34 = vpop.permute.xlu0 %353  ;;  %v697_v31 = vrot.slane %v688_v30, 5  ;;  %v690_v32 = vld [vmem:[#allocation2 + $0x18] sm:$0x3] }
 0x371   :  { %v358_v35 = vsel %vm357_vm8, %v354_v34, %v356_v25  ;;  %1390 = vmatprep.subr.bf16.mxu0 %v1488_v27  ;;  %v717_v34 = vld [vmem:[#allocation2 + $0x8] sm:$0xfe] }
 0x372   :  { %360 = vst [vmem:[#allocation2 + $0x30] sm:$0x7c] %v358_v35  ;;  %704 = vrot.lane.b32.xlu1 %v697_v31, %s1484_s1  ;;  %v719_v35 = vld [vmem:[#allocation2 + $0x18] sm:$0x3] }
 0x374   :  { %v368_v36 = vpop.permute.xlu0 %367 }
 0x375   :  { %v372_v38 = vsel %vm371_vm9, %v368_v36, %v370_v33  ;;  %v406_v44 = vld [vmem:[#allocation2 + $0x20] sm:$0xff]  ;;  %v700_v33 = vrot.slane %v690_v32, 5 }
 0x376   :  { %374 = vst [vmem:[#allocation2 + $0x40] ss:$-12 sps:$4 sm:$0x8f] %v372_v38   ;;  %v729_v38 = vrot.slane %v719_v35, 4 }
 0x377   :  { %v701_v36 = vsel %vm695_vm0, %v697_v31, %v700_v33 }
 0x378   :  { %v383_v39 = vpop.permute.xlu0 %382  ;;  %708 = vrot.lane.b32.xlu1 %v701_v36, %s1484_s1  ;;  %v647_v36 = vpop.permute.xlu1 %646 }
 0x379   :  { %v387_v40 = vsel %vm386_vm10, %v383_v39, %v385_v37  ;;  %v726_v37 = vrot.slane %v717_v34, 4 }
 0x37a   :  { %389 = vst [vmem:[#allocation2 + $0x50] ss:$-12 sps:$4 sm:$0xf1] %v387_v40   ;;  %v746_v40 = vld [vmem:[#allocation2 + $0x8] sm:$0xfe] }
 0x37b   :  { %v730_v39 = vsel %vm724_vm1, %v726_v37, %v729_v38  ;;  %v854_v38 = vld [vmem:[#allocation3 + $0x40] sm:$0xff] }
 0x37c   :  { %v396_v42 = vpop.permute.xlu0 %395  ;;  %733 = vrot.lane.b32.xlu1 %v726_v37, %s1487_s0 }
 0x37d   :  { %v400_v43 = vsel %vm399_vm11, %v396_v42, %v398_v41  ;;  %v407_v45 = vld [vmem:[#allocation2 + $0x30] sm:$0xff]  ;;  %v755_v41 = vrot.slane %v746_v40, 3  ;;  %v748_v42 = vld [vmem:[#allocation2 + $0x18] sm:$0x3] }
 0x37e   :  { %402 = vst [vmem:[#allocation2 + $0x50] sm:$0x3e] %v400_v43  ;;  %v1391_v46 = vpack.c.bf16 %v407_v45, %v406_v44  ;;  %v758_v43 = vrot.slane %v748_v42, 3  ;;  %v775_v45 = vld [vmem:[#allocation2 + $0x8] sm:$0xfe] }
 0x380   :  { %1392 = vmatpush3.bf16.msra.mxu0 %v1391_v46  ;;  %737 = vrot.lane.b32.xlu1 %v730_v39, %s1487_s0  ;;  %v759_v44 = vsel %vm753_vm5, %v755_v41, %v758_v43  ;;  %v784_v46 = vrot.slane %v775_v45, 2  ;;  %v651_v39 = vpop.permute.xlu1 %650 }
 0x381   :  { %1393 = vmatprep.subr.bf16.mxu0 %v1488_v27  ;;  %v408_v47 = vld [vmem:[#allocation2 + $0x40] sm:$0xff] }
 0x384   :  { %762 = vrot.lane.b32.xlu1 %v755_v41, %s1490_s27  ;;  %v676_v40 = vpop.permute.xlu1 %675 }
 0x385   :  { %v409_v48 = vld [vmem:[#allocation2 + $0x50] sm:$0xff] }
 0x386   :  { %v1394_v49 = vpack.c.bf16 %v409_v48, %v408_v47  ;;  %v777_v47 = vld [vmem:[#allocation2 + $0x18] sm:$0x3] }
 0x387   :  { %v787_v48 = vrot.slane %v777_v47, 2 }
 0x388   :  { %1395 = vmatpush3.bf16.msra.mxu0 %v1394_v49  ;;  %766 = vrot.lane.b32.xlu1 %v759_v44, %s1490_s27  ;;  %v680_v41 = vpop.permute.xlu1 %679 }
 0x38b   :  { %1324 = vmatmul.mubr.msk.f32.vlgmr.msra.gmra.mrb[2].mxu0 %vm410_vm12, %v403_v50  ;;  %v804_v50 = vld [vmem:[#allocation2 + $0x8] sm:$0xfe] }
 0x38c   :  { %791 = vrot.lane.b32.xlu1 %v784_v46, %s1491_s28  ;;  %v815_v52 = vrot.slane %v804_v50, 1 }
 0x38e   :  { %v817_v54 = vsel %vm811_vm6, %v815_v52, %v816_v53 }
 0x3e4   :  { %v705_v42 = vpop.permute.xlu1 %704 }
 0x3ea   :  { %v709_v43 = vpop.permute.xlu1 %708 }
 0x3ee   :  { %v734_v44 = vpop.permute.xlu1 %733 }
 0x3f2   :  { %v738_v45 = vpop.permute.xlu1 %737 }
 0x45e   :  { %v480_v27 = vpop.f32.mrb[2].mxu0 }
 0x45f   :  { %v484_v57 = vmax.f32 %v480_v27, 0.0  ;;  %v1325_v58 = vpop.f32.mrb[3].mxu0 }
 0x461   :  { %v486_v59 = vrot.slane %v484_v57, 7 }
 0x463   :  { %488 = vst [vmem:[#allocation2] sm:$0xfe] %v486_v59 }
 0x46a   :  { %v489_v60 = vld [vmem:[#allocation2] sm:$0xfe] }
 0x46b   :  { %v493_v61 = vrot.slane %v489_v60, 1  ;;  %v502_v62 = vld [vmem:[#allocation2] sm:$0xfe] }
 0x46c   :  { %v506_v63 = vrot.slane %v502_v62, 2  ;;  %v516_v0 = vld [vmem:[#allocation2] sm:$0xfe] }
 0x46d   :  { %495 = vrot.lane.b32.xlu0 %v493_v61, %s1485_s25  ;;  %v520_v1 = vrot.slane %v516_v0, 3  ;;  %v532_v22 = vld [vmem:[#allocation2] sm:$0xff] }
 0x471   :  { %508 = vrot.lane.b32.xlu0 %v506_v63, %s1484_s1 }
 0x475   :  { %522 = vrot.lane.b32.xlu0 %v520_v1, %s1487_s0 }
 0x4df   :  { %v496_v14 = vpop.permute.xlu0 %495 }
 0x4e0   :  { %v499_v16 = vsel %vm61_vm3, %v496_v14, %v498_v13 }
 0x4e1   :  { %501 = vst [vmem:[#allocation2 + $0x10] sm:$0x7f] %v499_v16 }
 0x4e3   :  { %v509_v17 = vpop.permute.xlu0 %508 }
 0x4e4   :  { %v512_v18 = vsel %vm73_vm2, %v509_v17, %v511_v15 }
 0x4e5   :  { %514 = vst [vmem:[#allocation2 + $0x10] sm:$0x80] %v512_v18  ;;  %515 = vst [vmem:[#allocation2 + $0x20] sm:$0x3f] %v512_v18 }
 0x4e7   :  { %v523_v20 = vpop.permute.xlu0 %522 }
 0x4e8   :  { %v526_v21 = vsel %vm85_vm4, %v523_v20, %v525_v19 }
 0x4e9   :  { %528 = vst [vmem:[#allocation2 + $0x20] sm:$0xc0] %v526_v21  ;;  %529 = vst [vmem:[#allocation2 + $0x30] sm:$0x1f] %v526_v21 }
 0x4ec   :  { %v533_v23 = vld [vmem:[#allocation2 + $0x10] sm:$0xff] }
 0x4ed   :  { %v1396_v24 = vpack.c.bf16 %v533_v23, %v532_v22 }
 0x4ef   :  { %1397 = vmatprep.subr.bf16.mxu1 %v1396_v24 }
 0x4f0   :  { %1399 = vmatpush3.bf16.msra.mxu1 %v1396_v24  ;;  %v534_v25 = vld [vmem:[#allocation2 + $0x20] sm:$0xff]  ;;  %v535_v26 = vld [vmem:[#allocation2 + $0x30] sm:$0xff] }
 0x4f1   :  { %v1400_v28 = vpack.c.bf16 %v535_v26, %v534_v25 }
 0x4f3   :  { %1401 = vmatprep.subr.bf16.mxu1 %v1400_v28 }
 0x4f4   :  { %1403 = vmatpush3.bf16.msra.mxu1 %v1400_v28 }
 0x4f7   :  { %1335 = vmatmul.mubr.msk.f32.vlgmr.msra.gmra.mrb[2].mxu1 %vm536_vm13, %v531_v29  ;;  %vm782_vm13 = vcmask 1045504  }
 0x4f8   :  { %v788_v49 = vsel %vm782_vm13, %v784_v46, %v787_v48  ;;  %v763_v46 = vpop.permute.xlu1 %762 }
 0x4f9   :  { %795 = vrot.lane.b32.xlu1 %v788_v49, %s1491_s28 }
 0x4fc   :  { %v767_v47 = vpop.permute.xlu1 %766 }
 0x4fd   :  { %820 = vrot.lane.b32.xlu1 %v817_v54, %s1492_s29 }
 0x500   :  { %v792_v51 = vpop.permute.xlu1 %791 }
 0x501   :  { %824 = vrot.lane.b32.xlu1 %v816_v53, %s1492_s29 }
 0x505   :  { %842 = vrot.lane.b32.xlu1 %v833_v55, %s1493_s30 }
 0x509   :  { %846 = vrot.lane.b32.xlu1 %v835_v56, %s1493_s30 }
 0x5ca   :  { %v1336_v27 = vpop.f32.mrb[2].mxu1 }
 0x5cb   :  { %v619_v57 = vmax.f32 %v1336_v27, 0.0  ;;  %v609_v58 = vpop.f32.mrb[3].mxu1 }
 0x5cc   :  { %v618_v59 = vmax.f32 %v609_v58, 0.0 }
 0x5cd   :  { %v624_v60 = vrot.slane %v619_v57, 7  ;;  %v796_v57 = vpop.permute.xlu1 %795 }
 0x5ce   :  { %v623_v61 = vrot.slane %v618_v59, 7 }
 0x5d0   :  { %v625_v62 = vsel %vm622_vm14, %v623_v61, %v624_v60  ;;  %628 = vst [vmem:[#allocation2] sm:$0xfe] %v623_v61 }
 0x5d1   :  { %629 = vst [vmem:[#allocation2 + $0x10] sm:$0x3] %v625_v62  ;;  %v821_v61 = vpop.permute.xlu1 %820 }
 0x5d7   :  { %v630_v63 = vld [vmem:[#allocation2] sm:$0xfe] }
 0x5d8   :  { %v638_v0 = vrot.slane %v630_v63, 7  ;;  %v658_v1 = vld [vmem:[#allocation2] sm:$0xfe]  ;;  %v805_v11 = vld [vmem:[#allocation2 + $0x10] sm:$0x3] }
 0x5d9   :  { %v667_v2 = vrot.slane %v658_v1, 6  ;;  %v687_v3 = vld [vmem:[#allocation2] sm:$0xfe]  ;;  %v632_v12 = vld [vmem:[#allocation2 + $0x10] sm:$0x3]  ;;  %v813_v13 = vrot.slane %v805_v11, 1  ;;  %v825_v1 = vpop.permute.xlu1 %824 }
 0x5da   :  { %644 = vrot.lane.b32.xlu0 %v638_v0, %s1485_s25  ;;  %v696_v4 = vrot.slane %v687_v3, 5  ;;  %v716_v5 = vld [vmem:[#allocation2] sm:$0xfe]  ;;  %v640_v14 = vrot.slane %v632_v12, 7  ;;  %v660_v15 = vld [vmem:[#allocation2 + $0x10] sm:$0x3] }
 0x5db   :  { %v725_v6 = vrot.slane %v716_v5, 4  ;;  %v745_v7 = vld [vmem:[#allocation2] sm:$0xfe]  ;;  %v669_v17 = vrot.slane %v660_v15, 6  ;;  %v689_v18 = vld [vmem:[#allocation2 + $0x10] sm:$0x3] }
 0x5dc   :  { %v754_v8 = vrot.slane %v745_v7, 3  ;;  %v774_v9 = vld [vmem:[#allocation2] sm:$0xfe]  ;;  %v641_v16 = vsel %vm622_vm14, %v638_v0, %v640_v14  ;;  %v698_v20 = vrot.slane %v689_v18, 5  ;;  %v718_v21 = vld [vmem:[#allocation2 + $0x10] sm:$0x3] }
 0x5dd   :  { %v783_v10 = vrot.slane %v774_v9, 2  ;;  %v670_v19 = vsel %vm666_vm15, %v667_v2, %v669_v17  ;;  %v727_v23 = vrot.slane %v718_v21, 4  ;;  %v747_v24 = vld [vmem:[#allocation2 + $0x10] sm:$0x3]  ;;  %v803_v31 = vld [vmem:[#allocation2] sm:$0xfe] }
 0x5de   :  { %673 = vrot.lane.b32.xlu0 %v667_v2, %s1489_s26  ;;  %v699_v22 = vsel %vm695_vm0, %v696_v4, %v698_v20  ;;  %v756_v26 = vrot.slane %v747_v24, 3  ;;  %v776_v28 = vld [vmem:[#allocation2 + $0x10] sm:$0x3]  ;;  %v812_v33 = vrot.slane %v803_v31, 1  ;;  %v832_v35 = vld [vmem:[#allocation2] sm:$0xfe] }
 0x5df   :  { %v728_v25 = vsel %vm724_vm1, %v725_v6, %v727_v23  ;;  %v785_v30 = vrot.slane %v776_v28, 2  ;;  %v834_v37 = vld [vmem:[#allocation2 + $0x10] sm:$0x3]  ;;  %vm867_vm15 = vcmask 719872   ;;  %v856_v55 = vld [vmem:[#allocation2] sm:$0xff]  ;;  %v843_v23 = vpop.permute.xlu1 %842 }
 0x5e0   :  { %v757_v29 = vsel %vm753_vm5, %v754_v8, %v756_v26  ;;  %v814_v34 = vsel %vm811_vm6, %v812_v33, %v813_v13  ;;  %1359 = vmatprep.mubr.msk.f32.mxu1 %vm867_vm15, %v854_v38  ;;  %v963_v38 = vld [vmem:[#allocation2 + $0x18] sm:$0xf] }
 0x5e1   :  { %v786_v32 = vsel %vm782_vm13, %v783_v10, %v785_v30 }
 0x5e2   :  { %702 = vrot.lane.b32.xlu0 %v696_v4, %s1484_s1 }
 0x5e3   :  { %v847_v30 = vpop.permute.xlu1 %846 }
 0x5e6   :  { %731 = vrot.lane.b32.xlu0 %v725_v6, %s1487_s0 }
 0x5ea   :  { %760 = vrot.lane.b32.xlu0 %v754_v8, %s1490_s27 }
 0x5ee   :  { %789 = vrot.lane.b32.xlu0 %v783_v10, %s1491_s28 }
 0x5f2   :  { %822 = vrot.lane.b32.xlu0 %v813_v13, %s1492_s29 }
 0x5f6   :  { %648 = vrot.lane.b32.xlu0 %v641_v16, %s1485_s25 }
 0x5fa   :  { %677 = vrot.lane.b32.xlu0 %v670_v19, %s1489_s26 }
 0x5fe   :  { %706 = vrot.lane.b32.xlu0 %v699_v22, %s1484_s1 }
 0x602   :  { %735 = vrot.lane.b32.xlu0 %v728_v25, %s1487_s0 }
 0x606   :  { %764 = vrot.lane.b32.xlu0 %v757_v29, %s1490_s27 }
 0x60a   :  { %793 = vrot.lane.b32.xlu0 %v786_v32, %s1491_s28 }
 0x60e   :  { %818 = vrot.lane.b32.xlu0 %v814_v34, %s1492_s29 }
 0x612   :  { %840 = vrot.lane.b32.xlu0 %v832_v35, %s1493_s30 }
 0x616   :  { %844 = vrot.lane.b32.xlu0 %v834_v37, %s1493_s30  ;;  %v961_v37 = vld [vmem:[#allocation2 + $0x8] sm:$0xfe] }
 0x64c   :  { %v645_v48 = vpop.permute.xlu0 %644 }
 0x64d   :  { %v652_v49 = vsel %vm61_vm3, %v645_v48, %v647_v36  ;;  %v855_v36 = vld [vmem:[#allocation3 + $0x48] sm:$0x7] }
 0x64e   :  { %656 = vst [vmem:[#allocation2 + $0x10] sm:$0xfc] %v652_v49  ;;  %v1026_v49 = vld [vmem:[#allocation2 + $0x18] sm:$0xf] }
 0x650   :  { %v674_v50 = vpop.permute.xlu0 %673 }
 0x651   :  { %v681_v52 = vsel %vm316_vm7, %v674_v50, %v676_v40  ;;  %v972_v40 = vrot.slane %v963_v38, 5  ;;  %v1035_v50 = vrot.slane %v1026_v49, 7 }
 0x652   :  { %685 = vst [vmem:[#allocation2 + $0x20] sm:$0xf8] %v681_v52 }
 0x654   :  { %v703_v53 = vpop.permute.xlu0 %702 }
 0x655   :  { %v710_v54 = vsel %vm73_vm2, %v703_v53, %v705_v42  ;;  %v857_v56 = vld [vmem:[#allocation2 + $0x10] sm:$0xff]  ;;  %v989_v42 = vld [vmem:[#allocation2 + $0x8] sm:$0xfe] }
 0x656   :  { %714 = vst [vmem:[#allocation2 + $0x30] sm:$0xf0] %v710_v54  ;;  %v1404_v27 = vpack.c.bf16 %v857_v56, %v856_v55 }
 0x658   :  { %v732_v58 = vpop.permute.xlu0 %731  ;;  %1405 = vmatprep.subr.bf16.mxu1 %v1404_v27 }
 0x659   :  { %v739_v59 = vsel %vm85_vm4, %v732_v58, %v734_v44  ;;  %1407 = vmatpush3.bf16.msra.mxu1 %v1404_v27  ;;  %v997_v44 = vrot.slane %v989_v42, 2 }
 0x65a   :  { %743 = vst [vmem:[#allocation2 + $0x40] sm:$0xe0] %v739_v59 }
 0x65c   :  { %v761_v60 = vpop.permute.xlu0 %760 }
 0x65d   :  { %v768_v62 = vsel %vm357_vm8, %v761_v60, %v763_v46 }
 0x65e   :  { %772 = vst [vmem:[#allocation2 + $0x50] sm:$0xc0] %v768_v62 }
 0x660   :  { %v790_v63 = vpop.permute.xlu0 %789 }
 0x661   :  { %v797_v0 = vsel %vm371_vm9, %v790_v63, %v792_v51 }
 0x662   :  { %801 = vst [vmem:[#allocation2 + $0x60] sm:$0x80] %v797_v0 }
 0x664   :  { %v823_v2 = vpop.permute.xlu0 %822 }
 0x665   :  { %v827_v3 = vsel %vm386_vm10, %v823_v2, %v825_v1 }
 0x666   :  { %831 = vst [vmem:[#allocation2 + $0x90] sm:$0x1] %v827_v3 }
 0x668   :  { %v649_v4 = vpop.permute.xlu0 %648 }
 0x669   :  { %v653_v5 = vsel %vm61_vm3, %v649_v4, %v651_v39  ;;  %v969_v39 = vrot.slane %v961_v37, 5 }
 0x66a   :  { %657 = vst [vmem:[#allocation2 + $0x20] sm:$0x7] %v653_v5 }
 0x66b   :  { %976 = vrot.lane.b32.xlu1 %v969_v39, %s1485_s25 }
 0x66c   :  { %v678_v6 = vpop.permute.xlu0 %677 }
 0x66d   :  { %v682_v7 = vsel %vm316_vm7, %v678_v6, %v680_v41  ;;  %v973_v41 = vsel %vm695_vm0, %v969_v39, %v972_v40  ;;  %v1052_v40 = vld [vmem:[#allocation3 + $0x58] sm:$0x1f] }
 0x66e   :  { %686 = vst [vmem:[#allocation2 + $0x30] sm:$0xf] %v682_v7 }
 0x66f   :  { %980 = vrot.lane.b32.xlu1 %v973_v41, %s1485_s25  ;;  %v1151_v41 = vld [vmem:[#allocation3 + $0x60] sm:$0xff] }
 0x670   :  { %v707_v8 = vpop.permute.xlu0 %706 }
 0x671   :  { %v711_v9 = vsel %vm73_vm2, %v707_v8, %v709_v43  ;;  %v858_v12 = vld [vmem:[#allocation2 + $0x20] sm:$0xff]  ;;  %v991_v43 = vld [vmem:[#allocation2 + $0x18] sm:$0xf] }
 0x672   :  { %715 = vst [vmem:[#allocation2 + $0x40] sm:$0x1f] %v711_v9  ;;  %v1051_v9 = vld [vmem:[#allocation3 + $0x50] sm:$0xff] }
 0x673   :  { %1004 = vrot.lane.b32.xlu1 %v997_v44, %s1484_s1  ;;  %1374 = vmatprep.mubr.msk.f32.mxu0 %vm410_vm12, %v1051_v9 }
 0x674   :  { %v736_v10 = vpop.permute.xlu0 %735 }
 0x675   :  { %v740_v11 = vsel %vm85_vm4, %v736_v10, %v738_v45  ;;  %v859_v13 = vld [vmem:[#allocation2 + $0x30] sm:$0xff]  ;;  %v1000_v45 = vrot.slane %v991_v43, 2 }
 0x676   :  { %744 = vst [vmem:[#allocation2 + $0x50] sm:$0x3f] %v740_v11  ;;  %v1408_v14 = vpack.c.bf16 %v859_v13, %v858_v12 }
 0x677   :  { %v1001_v46 = vsel %vm782_vm13, %v997_v44, %v1000_v45 }
 0x678   :  { %1409 = vmatprep.subr.bf16.mxu1 %v1408_v14  ;;  %v765_v15 = vpop.permute.xlu0 %764  ;;  %1008 = vrot.lane.b32.xlu1 %v1001_v46, %s1484_s1 }
 0x679   :  { %v769_v16 = vsel %vm357_vm8, %v765_v15, %v767_v47  ;;  %1411 = vmatpush3.bf16.msra.mxu1 %v1408_v14  ;;  %v860_v19 = vld [vmem:[#allocation2 + $0x40] sm:$0xff]  ;;  %v1024_v47 = vld [vmem:[#allocation2 + $0x8] sm:$0xfe] }
 0x67a   :  { %773 = vst [vmem:[#allocation2 + $0x60] sm:$0x7f] %v769_v16  ;;  %v1032_v48 = vrot.slane %v1024_v47, 7 }
 0x67c   :  { %v794_v17 = vpop.permute.xlu0 %793  ;;  %1012 = vrot.lane.b32.xlu1 %v1000_v45, %s1484_s1  ;;  %v1036_v51 = vsel %vm622_vm14, %v1032_v48, %v1035_v50 }
 0x67d   :  { %v798_v18 = vsel %vm371_vm9, %v794_v17, %v796_v57  ;;  %v861_v20 = vld [vmem:[#allocation2 + $0x50] sm:$0xff] }
 0x67e   :  { %v1412_v21 = vpack.c.bf16 %v861_v20, %v860_v19 }
 0x680   :  { %1413 = vmatprep.subr.bf16.mxu1 %v1412_v21  ;;  %v819_v22 = vpop.permute.xlu0 %818  ;;  %1039 = vrot.lane.b32.xlu1 %v1032_v48, %s1487_s0 }
 0x681   :  { %v826_v24 = vsel %vm386_vm10, %v819_v22, %v821_v61  ;;  %1415 = vmatpush3.bf16.msra.mxu1 %v1412_v21  ;;  %v862_v25 = vld [vmem:[#allocation2 + $0x60] sm:$0xff] }
 0x682   :  { %v1416_v26 = vpack.c.bf16 %v798_v18, %v862_v25 }
 0x684   :  { %v841_v28 = vpop.permute.xlu0 %840  ;;  %1417 = vmatprep.subr.bf16.mxu1 %v1416_v26  ;;  %1043 = vrot.lane.b32.xlu1 %v1036_v51, %s1487_s0 }
 0x685   :  { %v848_v29 = vsel %vm399_vm11, %v841_v28, %v843_v23  ;;  %1419 = vmatpush3.bf16.msra.mxu1 %v1416_v26 }
 0x686   :  { %852 = vst [vmem:[#allocation2 + $0x90] sm:$0xfe] %v848_v29 }
 0x688   :  { %v845_v31 = vpop.permute.xlu0 %844 }
 0x689   :  { %v849_v32 = vsel %vm399_vm11, %v845_v31, %v847_v30 }
 0x68a   :  { %853 = vst [vmem:[#allocation2 + $0xa0] sm:$0x3] %v849_v32 }
 0x68d   :  { %v865_v33 = vld [vmem:[#allocation2 + $0x90] sm:$0xff] }
 0x68e   :  { %v1420_v34 = vpack.c.bf16 %v865_v33, %v826_v24 }
 0x690   :  { %1421 = vmatprep.subr.bf16.mxu1 %v1420_v34 }
 0x691   :  { %1423 = vmatpush3.bf16.msra.mxu1 %v1420_v34  ;;  %v866_v35 = vld [vmem:[#allocation2 + $0xa0] sm:$0xff] }
 0x692   :  { %1357 = vmatprep.subr.mxu1 %v866_v35 }
 0x695   :  { %1358 = vmatpush3.msra.mxu1 %v866_v35 }
 0x696   :  { %1360 = vmatmul.mubr.msk.f32.vlgmr.msra.gmra.mrb[4].mxu1 %vm867_vm15, %v855_v36 }
 0x6dd   :  { %v977_v10 = vpop.permute.xlu1 %976 }
 0x6e1   :  { %v981_v11 = vpop.permute.xlu1 %980 }
 0x6e5   :  { %v1005_v12 = vpop.permute.xlu1 %1004 }
 0x6ea   :  { %v1009_v13 = vpop.permute.xlu1 %1008 }
 0x6ee   :  { %v1013_v15 = vpop.permute.xlu1 %1012 }
 0x6f2   :  { %v1040_v19 = vpop.permute.xlu1 %1039 }
 0x6f6   :  { %v1044_v32 = vpop.permute.xlu1 %1043 }
 0x769   :  { %v1361_v52 = vpop.f32.mrb[4].mxu1 }
 0x76a   :  { %v950_v53 = vmax.f32 %v1361_v52, 0.0  ;;  %v940_v54 = vpop.f32.mrb[5].mxu1  ;;  %v1152_v52 = vld [vmem:[#allocation3 + $0x68] sm:$0x7f] }
 0x76b   :  { %v949_v55 = vmax.f32 %v940_v54, 0.0 }
 0x76c   :  { %v954_v56 = vrot.slane %v950_v53, 7 }
 0x76d   :  { %v953_v27 = vrot.slane %v949_v55, 7 }
 0x76f   :  { %v955_v57 = vsel %vm622_vm14, %v953_v27, %v954_v56  ;;  %958 = vst [vmem:[#allocation2] sm:$0xfe] %v953_v27 }
 0x770   :  { %959 = vst [vmem:[#allocation2 + $0x10] sm:$0xf] %v955_v57 }
 0x776   :  { %v960_v58 = vld [vmem:[#allocation2] sm:$0xfe] }
 0x777   :  { %v968_v59 = vrot.slane %v960_v58, 5  ;;  %v988_v60 = vld [vmem:[#allocation2] sm:$0xfe]  ;;  %v990_v0 = vld [vmem:[#allocation2 + $0x10] sm:$0xf] }
 0x778   :  { %v996_v61 = vrot.slane %v988_v60, 2  ;;  %v1023_v62 = vld [vmem:[#allocation2] sm:$0xfe]  ;;  %v962_v1 = vld [vmem:[#allocation2 + $0x10] sm:$0xf]  ;;  %v998_v2 = vrot.slane %v990_v0, 2 }
 0x779   :  { %974 = vrot.lane.b32.xlu0 %v968_v59, %s1485_s25  ;;  %v1031_v63 = vrot.slane %v1023_v62, 7  ;;  %v970_v3 = vrot.slane %v962_v1, 5  ;;  %v1025_v5 = vld [vmem:[#allocation2 + $0x10] sm:$0xf]  ;;  %v1053_v22 = vld [vmem:[#allocation2] sm:$0xff] }
 0x77a   :  { %v999_v6 = vsel %vm782_vm13, %v996_v61, %v998_v2  ;;  %v1033_v7 = vrot.slane %v1025_v5, 7 }
 0x77b   :  { %v971_v4 = vsel %vm695_vm0, %v968_v59, %v970_v3 }
 0x77c   :  { %v1034_v8 = vsel %vm622_vm14, %v1031_v63, %v1033_v7 }
 0x77d   :  { %1002 = vrot.lane.b32.xlu0 %v996_v61, %s1484_s1 }
 0x781   :  { %1037 = vrot.lane.b32.xlu0 %v1031_v63, %s1487_s0 }
 0x785   :  { %1010 = vrot.lane.b32.xlu0 %v998_v2, %s1484_s1 }
 0x789   :  { %978 = vrot.lane.b32.xlu0 %v971_v4, %s1485_s25 }
 0x78d   :  { %1006 = vrot.lane.b32.xlu0 %v999_v6, %s1484_s1 }
 0x791   :  { %1041 = vrot.lane.b32.xlu0 %v1034_v8, %s1487_s0 }
 0x7eb   :  { %v975_v14 = vpop.permute.xlu0 %974 }
 0x7ec   :  { %v982_v16 = vsel %vm61_vm3, %v975_v14, %v977_v10 }
 0x7ed   :  { %986 = vst [vmem:[#allocation2 + $0x10] sm:$0xf0] %v982_v16 }
 0x7ef   :  { %v1003_v17 = vpop.permute.xlu0 %1002 }
 0x7f0   :  { %v1014_v18 = vsel %vm73_vm2, %v1003_v17, %v1005_v12 }
 0x7f1   :  { %1020 = vst [vmem:[#allocation2 + $0x20] sm:$0x80] %v1014_v18 }
 0x7f3   :  { %v1038_v20 = vpop.permute.xlu0 %1037 }
 0x7f4   :  { %v1045_v21 = vsel %vm85_vm4, %v1038_v20, %v1040_v19  ;;  %v1054_v23 = vld [vmem:[#allocation2 + $0x10] sm:$0xff] }
 0x7f5   :  { %1049 = vst [vmem:[#allocation2 + $0x40] sm:$0xfc] %v1045_v21  ;;  %v1424_v24 = vpack.c.bf16 %v1054_v23, %v1053_v22 }
 0x7f7   :  { %1425 = vmatprep.subr.bf16.mxu0 %v1424_v24  ;;  %v1011_v25 = vpop.permute.xlu0 %1010 }
 0x7f8   :  { %v1016_v26 = vsel %vm73_vm2, %v1011_v25, %v1013_v15  ;;  %1427 = vmatpush3.bf16.msra.mxu0 %v1424_v24 }
 0x7f9   :  { %1022 = vst [vmem:[#allocation2 + $0x40] sm:$0x3] %v1016_v26 }
 0x7fb   :  { %v979_v28 = vpop.permute.xlu0 %978 }
 0x7fc   :  { %v983_v29 = vsel %vm61_vm3, %v979_v28, %v981_v11 }
 0x7fd   :  { %987 = vst [vmem:[#allocation2 + $0x20] sm:$0x7f] %v983_v29 }
 0x7ff   :  { %v1007_v30 = vpop.permute.xlu0 %1006 }
 0x800   :  { %v1015_v31 = vsel %vm73_vm2, %v1007_v30, %v1009_v13  ;;  %v1057_v37 = vld [vmem:[#allocation2 + $0x40] sm:$0xff]  ;;  %vm1694_vm2 = vcmask 130048  }
 0x801   :  { %1021 = vst [vmem:[#allocation2 + $0x30] sm:$0xff] %v1015_v31  ;;  %vm1695_vm3 = vmmov %vm1694_vm2 }
 0x803   :  { %v1042_v33 = vpop.permute.xlu0 %1041 }
 0x804   :  { %v1046_v34 = vsel %vm85_vm4, %v1042_v33, %v1044_v32  ;;  %v1055_v35 = vld [vmem:[#allocation2 + $0x20] sm:$0xff] }
 0x805   :  { %1050 = vst [vmem:[#allocation2 + $0x50] sm:$0x1f] %v1046_v34  ;;  %v1428_v36 = vpack.c.bf16 %v1015_v31, %v1055_v35 }
 0x807   :  { %1429 = vmatprep.subr.bf16.mxu0 %v1428_v36 }
 0x808   :  { %1431 = vmatpush3.bf16.msra.mxu0 %v1428_v36 }
 0x80c   :  { %v1058_v38 = vld [vmem:[#allocation2 + $0x50] sm:$0xff] }
 0x80d   :  { %v1432_v39 = vpack.c.bf16 %v1058_v38, %v1057_v37 }
 0x80f   :  { %1433 = vmatprep.subr.bf16.mxu0 %v1432_v39 }
 0x810   :  { %1435 = vmatpush3.bf16.msra.mxu0 %v1432_v39 }
 0x813   :  { %1375 = vmatmul.mubr.msk.f32.vlgmr.msra.gmra.mrb[4].mxu0 %vm410_vm12, %v1052_v40 }
 0x814   :  { %1381 = vmatprep.mubr.msk.f32.mxu0 %vm1694_vm2, %v1151_v41 }
 0x8e6   :  { %v1376_v42 = vpop.f32.mrb[4].mxu0 }
 0x8e7   :  { %v1141_v43 = vmax.f32 %v1376_v42, 0.0  ;;  %v1131_v44 = vpop.f32.mrb[5].mxu0 }
 0x8e8   :  { %v1140_v45 = vmax.f32 %v1131_v44, 0.0 }
 0x8e9   :  { %v1145_v46 = vrot.slane %v1141_v43, 7 }
 0x8ea   :  { %v1144_v47 = vrot.slane %v1140_v45, 7 }
 0x8ec   :  { %v1146_v48 = vsel %vm622_vm14, %v1144_v47, %v1145_v46  ;;  %1149 = vst [vmem:[#allocation2] sm:$0xfe] %v1144_v47 }
 0x8ed   :  { %1150 = vst [vmem:[#allocation2 + $0x10] sm:$0x3f] %v1146_v48 }
 0x8f3   :  { %v1153_v49 = vld [vmem:[#allocation2] sm:$0xff] }
 0x8f4   :  { %v1154_v50 = vld [vmem:[#allocation2 + $0x10] sm:$0xff] }
 0x8f5   :  { %v1436_v51 = vpack.c.bf16 %v1154_v50, %v1153_v49 }
 0x8f7   :  { %1437 = vmatprep.subr.bf16.mxu0 %v1436_v51 }
 0x8f8   :  { %1439 = vmatpush3.bf16.msra.mxu0 %v1436_v51 }
 0x8fb   :  { %1382 = vmatmul.mubr.msk.f32.vlgmr.msra.gmra.mrb[6].mxu0 %vm1695_vm3, %v1152_v52 }
 0x9ce   :  { %v1383_v53 = vpop.f32.mrb[6].mxu0 }
 0x9cf   :  { %v1237_v54 = vmax.f32 %v1383_v53, 0.0  ;;  %v1227_v55 = vpop.f32.mrb[7].mxu0 }
 0x9d0   :  { %v1236_v56 = vmax.f32 %v1227_v55, 0.0 }
 0x9d1   :  { %1239 = vst [vmem:[%s1692_s2 + $0x8] sm:$0x7f] %v1237_v54 }
 0x9d2   :  { %1238 = vst [vmem:[%s1692_s2] sm:$0xff] %v1236_v56 }
 0x9d3   :  { %1244 = vsyncpa [#allocation4], 1 }

</bundles_post_ra>
